<compile_context>
chip_gen: v7x
topology: tpu7x:2x2x1
jax: 0.10.0
libtpu: 0.0.40
codegen_flags: <defaults>
</compile_context>

<pallas_src>
import jax
import jax.numpy as jnp
from jax.experimental import pallas as pl
from jax.experimental.pallas import tpu as pltpu


# (in_features, out_features) of each Linear layer in the PyTorch module.
_DIMS = [(22, 256), (256, 128), (128, 64), (64, 32), (32, 3)]
_BN_EPS = 1e-5


def _mlp_kernel(x_ref,
                w2_ref, b2_ref,
                w3_ref, b3_ref,
                w4_ref, b4_ref,
                w5_ref, b5_ref,
                wo_ref, bo_ref,
                out_ref):
    """One batch tile of the whole MLP, entirely in VMEM.

    Bias + BatchNorm are pre-folded into (W', b'); dropout is identity in eval,
    so each hidden layer is dot -> +bias -> ReLU, and the head is dot -> +bias.
    """

    def layer(h, w_ref, b_ref, relu=True):
        # bf16 x bf16 on the MXU, f32 accumulation; elementwise stays f32.
        y = jnp.dot(h.astype(jnp.bfloat16), w_ref[...],
                    preferred_element_type=jnp.float32)
        y = y + b_ref[...]                      # [1, out] broadcast, f32
        return jnp.maximum(y, 0.0) if relu else y

    h = layer(x_ref[...], w2_ref, b2_ref)       # [TB, 256]
    h = layer(h, w3_ref, b3_ref)                # [TB, 128]
    h = layer(h, w4_ref, b4_ref)                # [TB, 64]
    h = layer(h, w5_ref, b5_ref)                # [TB, 32]
    logits = layer(h, wo_ref, bo_ref, relu=False)   # [TB, 3]
    out_ref[...] = logits.astype(out_ref.dtype)


def _fold_params(params):
    """Fold linear bias + eval-mode BatchNorm into (W', b'); weights in bf16."""
    flat = []
    for name in ("l2", "l3", "l4", "l5"):
        p = params[name]
        scale = p["gamma"] / jnp.sqrt(p["running_var"] + _BN_EPS)
        shift = p["beta"] - p["running_mean"] * scale
        w = (p["w"] * scale[None, :]).astype(jnp.bfloat16)          # [in, out]
        b = (p["b"] * scale + shift).astype(jnp.float32)[None, :]   # [1, out]
        flat += [w, b]
    flat += [params["out"]["w"].astype(jnp.bfloat16),               # [32, 3]
             params["out"]["b"].astype(jnp.float32)[None, :]]       # [1, 3]
    return flat


def _resident_spec(shape):
    """Weight/bias block: same block index every grid step -> stays VMEM-resident.

    Constant-index blocks don't need double-buffering; Buffered(1) saves the
    second copy (and a prologue DMA). Fall back silently on jax versions whose
    BlockSpec has no pipeline_mode kwarg.
    """
    try:
        return pl.BlockSpec(shape, lambda i: (0, 0), pipeline_mode=pl.Buffered(1))
    except TypeError:
        return pl.BlockSpec(shape, lambda i: (0, 0))


def _choose_tb(B, tile_b):
    """Batch tile: full batch when tiny, otherwise >= 2 grid steps (v7x megacore),
    rounded to a multiple of 16 for clean sublane packing."""
    if B <= 32:
        return B
    half = ((-(-B // 2) + 15) // 16) * 16
    return max(16, min(tile_b, half))


def classifier_forward(x, params, *, tile_b=2048):
    """x: [B, 22] float32. params: dict produced by init_params(). Returns [B, 3] f32."""
    B, F = x.shape
    TB = _choose_tb(B, tile_b)
    grid = (pl.cdiv(B, TB),)

    flat = _fold_params(params)

    in_specs = [pl.BlockSpec((TB, F), lambda i: (i, 0))]     # f32 x streamed in
    in_specs += [_resident_spec(a.shape) for a in flat]
    out_spec = pl.BlockSpec((TB, 3), lambda i: (i, 0))

    flops = 2 * B * sum(fi * fo for fi, fo in _DIMS)
    bytes_accessed = (B * F * 4                      # f32 x
                      + B * 3 * 4                    # f32 logits
                      + sum(int(a.size) * a.dtype.itemsize for a in flat))

    return pl.pallas_call(
        _mlp_kernel,
        out_shape=jax.ShapeDtypeStruct((B, 3), jnp.float32),
        grid=grid,
        in_specs=in_specs,
        out_specs=out_spec,
        compiler_params=pltpu.CompilerParams(
            dimension_semantics=("parallel",),
            vmem_limit_bytes=32 * 1024 * 1024),
        cost_estimate=pl.CostEstimate(
            flops=flops, transcendentals=0, bytes_accessed=bytes_accessed),
    )(x, *flat)


def classifier_reference(x, params):
    """Pure-JAX f32 reference of the eval-mode forward pass."""
    h = x
    for name in ("l2", "l3", "l4", "l5"):
        p = params[name]
        h = h @ p["w"] + p["b"]
        scale = p["gamma"] / jnp.sqrt(p["running_var"] + _BN_EPS)
        h = (h - p["running_mean"]) * scale + p["beta"]
        h = jnp.maximum(h, 0.0)
    return h @ params["out"]["w"] + params["out"]["b"]


def init_params(key):
    """Deterministic init mimicking PyTorch defaults (U(-1/sqrt(fan_in), +))."""
    names = ["l2", "l3", "l4", "l5"]
    params = {}
    for name, (fin, fout) in zip(names, _DIMS[:4]):
        key, kw, kb, km, kv = jax.random.split(key, 5)
        bound = 1.0 / jnp.sqrt(fin)
        params[name] = dict(
            w=jax.random.uniform(kw, (fin, fout), jnp.float32, -bound, bound),
            b=jax.random.uniform(kb, (fout,), jnp.float32, -bound, bound),
            gamma=jnp.ones((fout,), jnp.float32),
            beta=jnp.zeros((fout,), jnp.float32),
            # Non-trivial (but deterministic) running stats so BN actually does work.
            running_mean=0.1 * jax.random.normal(km, (fout,), jnp.float32),
            running_var=1.0 + 0.1 * jax.random.uniform(kv, (fout,), jnp.float32),
        )
    key, kw, kb = jax.random.split(key, 3)
    bound = 1.0 / jnp.sqrt(32)
    params["out"] = dict(
        w=jax.random.uniform(kw, (32, 3), jnp.float32, -bound, bound),
        b=jax.random.uniform(kb, (3,), jnp.float32, -bound, bound),
    )
    return params


if __name__ == "__main__":
    key = jax.random.PRNGKey(0)
    key, kx = jax.random.split(key)
    params = init_params(key)

    fwd = jax.jit(classifier_forward)

    # Small single-block case (matches the module's natural tiny-batch usage).
    B = 8
    x = jax.random.normal(kx, (B, 22), jnp.float32)
    y = fwd(x, params)
    jax.block_until_ready(y)
    assert y.shape == (B, 3) and y.dtype == jnp.float32
    assert bool(jnp.all(jnp.isfinite(y)))
    y_ref = classifier_reference(x, params)
    # Loose tolerance: kernel uses bf16 weights/activations on the MXU.
    assert bool(jnp.allclose(y, y_ref, atol=1e-1, rtol=1e-1))

    # Multi-step grid path: exercises batch tiling, resident weights across steps,
    # and a partial last block.
    key, kx2 = jax.random.split(key)
    B2 = 100
    x2 = jax.random.normal(kx2, (B2, 22), jnp.float32)
    y2 = fwd(x2, params)
    jax.block_until_ready(y2)
    y2_ref = classifier_reference(x2, params)
    assert y2.shape == (B2, 3)
    assert bool(jnp.all(jnp.isfinite(y2)))
    assert bool(jnp.allclose(y2, y2_ref, atol=1e-1, rtol=1e-1))

    print("KERNEL_OK")
</pallas_src>

<mosaic_0001>
module attributes {stable_mosaic.version = 11 : i64} {
  func.func @_mlp_kernel(%arg0: i32, %arg1: memref<8x22xf32, #tpu.memory_space<vmem>>, %arg2: memref<22x256xbf16, #tpu.memory_space<vmem>>, %arg3: memref<1x256xf32, #tpu.memory_space<vmem>>, %arg4: memref<256x128xbf16, #tpu.memory_space<vmem>>, %arg5: memref<1x128xf32, #tpu.memory_space<vmem>>, %arg6: memref<128x64xbf16, #tpu.memory_space<vmem>>, %arg7: memref<1x64xf32, #tpu.memory_space<vmem>>, %arg8: memref<64x32xbf16, #tpu.memory_space<vmem>>, %arg9: memref<1x32xf32, #tpu.memory_space<vmem>>, %arg10: memref<32x3xbf16, #tpu.memory_space<vmem>>, %arg11: memref<1x3xf32, #tpu.memory_space<vmem>>, %arg12: memref<8x3xf32, #tpu.memory_space<vmem>>) attributes {dimension_semantics = [#tpu.dimension_semantics<parallel>], iteration_bounds = array<i64: 1>, scalar_prefetch = 0 : i64, scratch_operands = 0 : i64, tpu.core_type = #tpu.core_type<tc>, window_params = [{transform_indices = @transform_0, window_bounds = array<i64: 8, 22>}, {pipeline_mode = #tpu.pipeline_mode<synchronous>, transform_indices = @transform_1, window_bounds = array<i64: 22, 256>}, {pipeline_mode = #tpu.pipeline_mode<synchronous>, transform_indices = @transform_2, window_bounds = array<i64: 1, 256>}, {pipeline_mode = #tpu.pipeline_mode<synchronous>, transform_indices = @transform_3, window_bounds = array<i64: 256, 128>}, {pipeline_mode = #tpu.pipeline_mode<synchronous>, transform_indices = @transform_4, window_bounds = array<i64: 1, 128>}, {pipeline_mode = #tpu.pipeline_mode<synchronous>, transform_indices = @transform_5, window_bounds = array<i64: 128, 64>}, {pipeline_mode = #tpu.pipeline_mode<synchronous>, transform_indices = @transform_6, window_bounds = array<i64: 1, 64>}, {pipeline_mode = #tpu.pipeline_mode<synchronous>, transform_indices = @transform_7, window_bounds = array<i64: 64, 32>}, {pipeline_mode = #tpu.pipeline_mode<synchronous>, transform_indices = @transform_8, window_bounds = array<i64: 1, 32>}, {pipeline_mode = #tpu.pipeline_mode<synchronous>, transform_indices = @transform_9, window_bounds = array<i64: 32, 3>}, {pipeline_mode = #tpu.pipeline_mode<synchronous>, transform_indices = @transform_10, window_bounds = array<i64: 1, 3>}, {transform_indices = @transform_11, window_bounds = array<i64: 8, 3>}]} {
    %c0 = arith.constant 0 : index
    %c0_0 = arith.constant 0 : index
    %0 = vector.load %arg1[%c0, %c0_0] : memref<8x22xf32, #tpu.memory_space<vmem>>, vector<8x22xf32>
    %1 = arith.truncf %0 : vector<8x22xf32> to vector<8x22xbf16>
    %c0_1 = arith.constant 0 : index
    %c0_2 = arith.constant 0 : index
    %2 = vector.load %arg2[%c0_1, %c0_2] : memref<22x256xbf16, #tpu.memory_space<vmem>>, vector<22x256xbf16>
    %cst = arith.constant dense<0.000000e+00> : vector<8x256xf32>
    %3 = tpu.matmul %1, %2, %cst {dimension_numbers = #tpu.dot_dimension_numbers<[1], [0], [0], [1], [0, 0, 1, 1], [], []>} : vector<8x22xbf16>, vector<22x256xbf16>, vector<8x256xf32> -> vector<8x256xf32>
    %c0_3 = arith.constant 0 : index
    %c0_4 = arith.constant 0 : index
    %4 = vector.load %arg3[%c0_3, %c0_4] : memref<1x256xf32, #tpu.memory_space<vmem>>, vector<1x256xf32>
    %5 = vector.broadcast %4 : vector<1x256xf32> to vector<8x256xf32>
    %6 = arith.addf %3, %5 : vector<8x256xf32>
    %cst_5 = arith.constant 0.000000e+00 : f32
    %7 = vector.broadcast %cst_5 : f32 to vector<8x256xf32>
    %8 = arith.maximumf %6, %7 : vector<8x256xf32>
    %9 = arith.truncf %8 : vector<8x256xf32> to vector<8x256xbf16>
    %c0_6 = arith.constant 0 : index
    %c0_7 = arith.constant 0 : index
    %10 = vector.load %arg4[%c0_6, %c0_7] : memref<256x128xbf16, #tpu.memory_space<vmem>>, vector<256x128xbf16>
    %cst_8 = arith.constant dense<0.000000e+00> : vector<8x128xf32>
    %11 = tpu.matmul %9, %10, %cst_8 {dimension_numbers = #tpu.dot_dimension_numbers<[1], [0], [0], [1], [0, 0, 1, 1], [], []>} : vector<8x256xbf16>, vector<256x128xbf16>, vector<8x128xf32> -> vector<8x128xf32>
    %c0_9 = arith.constant 0 : index
    %c0_10 = arith.constant 0 : index
    %12 = vector.load %arg5[%c0_9, %c0_10] : memref<1x128xf32, #tpu.memory_space<vmem>>, vector<1x128xf32>
    %13 = vector.broadcast %12 : vector<1x128xf32> to vector<8x128xf32>
    %14 = arith.addf %11, %13 : vector<8x128xf32>
    %cst_11 = arith.constant 0.000000e+00 : f32
    %15 = vector.broadcast %cst_11 : f32 to vector<8x128xf32>
    %16 = arith.maximumf %14, %15 : vector<8x128xf32>
    %17 = arith.truncf %16 : vector<8x128xf32> to vector<8x128xbf16>
    %c0_12 = arith.constant 0 : index
    %c0_13 = arith.constant 0 : index
    %18 = vector.load %arg6[%c0_12, %c0_13] : memref<128x64xbf16, #tpu.memory_space<vmem>>, vector<128x64xbf16>
    %cst_14 = arith.constant dense<0.000000e+00> : vector<8x64xf32>
    %19 = tpu.matmul %17, %18, %cst_14 {dimension_numbers = #tpu.dot_dimension_numbers<[1], [0], [0], [1], [0, 0, 1, 1], [], []>} : vector<8x128xbf16>, vector<128x64xbf16>, vector<8x64xf32> -> vector<8x64xf32>
    %c0_15 = arith.constant 0 : index
    %c0_16 = arith.constant 0 : index
    %20 = vector.load %arg7[%c0_15, %c0_16] : memref<1x64xf32, #tpu.memory_space<vmem>>, vector<1x64xf32>
    %21 = vector.broadcast %20 : vector<1x64xf32> to vector<8x64xf32>
    %22 = arith.addf %19, %21 : vector<8x64xf32>
    %cst_17 = arith.constant 0.000000e+00 : f32
    %23 = vector.broadcast %cst_17 : f32 to vector<8x64xf32>
    %24 = arith.maximumf %22, %23 : vector<8x64xf32>
    %25 = arith.truncf %24 : vector<8x64xf32> to vector<8x64xbf16>
    %c0_18 = arith.constant 0 : index
    %c0_19 = arith.constant 0 : index
    %26 = vector.load %arg8[%c0_18, %c0_19] : memref<64x32xbf16, #tpu.memory_space<vmem>>, vector<64x32xbf16>
    %cst_20 = arith.constant dense<0.000000e+00> : vector<8x32xf32>
    %27 = tpu.matmul %25, %26, %cst_20 {dimension_numbers = #tpu.dot_dimension_numbers<[1], [0], [0], [1], [0, 0, 1, 1], [], []>} : vector<8x64xbf16>, vector<64x32xbf16>, vector<8x32xf32> -> vector<8x32xf32>
    %c0_21 = arith.constant 0 : index
    %c0_22 = arith.constant 0 : index
    %28 = vector.load %arg9[%c0_21, %c0_22] : memref<1x32xf32, #tpu.memory_space<vmem>>, vector<1x32xf32>
    %29 = vector.broadcast %28 : vector<1x32xf32> to vector<8x32xf32>
    %30 = arith.addf %27, %29 : vector<8x32xf32>
    %cst_23 = arith.constant 0.000000e+00 : f32
    %31 = vector.broadcast %cst_23 : f32 to vector<8x32xf32>
    %32 = arith.maximumf %30, %31 : vector<8x32xf32>
    %33 = arith.truncf %32 : vector<8x32xf32> to vector<8x32xbf16>
    %c0_24 = arith.constant 0 : index
    %c0_25 = arith.constant 0 : index
    %34 = vector.load %arg10[%c0_24, %c0_25] : memref<32x3xbf16, #tpu.memory_space<vmem>>, vector<32x3xbf16>
    %cst_26 = arith.constant dense<0.000000e+00> : vector<8x3xf32>
    %35 = tpu.matmul %33, %34, %cst_26 {dimension_numbers = #tpu.dot_dimension_numbers<[1], [0], [0], [1], [0, 0, 1, 1], [], []>} : vector<8x32xbf16>, vector<32x3xbf16>, vector<8x3xf32> -> vector<8x3xf32>
    %c0_27 = arith.constant 0 : index
    %c0_28 = arith.constant 0 : index
    %36 = vector.load %arg11[%c0_27, %c0_28] : memref<1x3xf32, #tpu.memory_space<vmem>>, vector<1x3xf32>
    %37 = vector.broadcast %36 : vector<1x3xf32> to vector<8x3xf32>
    %38 = arith.addf %35, %37 : vector<8x3xf32>
    %c0_29 = arith.constant 0 : index
    %c0_30 = arith.constant 0 : index
    %39 = vector.load %arg12[%c0_29, %c0_30] : memref<8x3xf32, #tpu.memory_space<vmem>>, vector<8x3xf32>
    tpu.vector_store %arg12[%c0_29, %c0_30], %38 {strides = array<i32>} : memref<8x3xf32, #tpu.memory_space<vmem>>, vector<8x3xf32>,
    return
  }
  func.func @transform_0(%arg0: i32) -> (i32, i32) {
    %c0_i32 = arith.constant 0 : i32
    %c0_i32_0 = arith.constant 0 : i32
    return %arg0, %c0_i32 : i32, i32
  }
  func.func @transform_1(%arg0: i32) -> (i32, i32) {
    %c0_i32 = arith.constant 0 : i32
    %c0_i32_0 = arith.constant 0 : i32
    %c0_i32_1 = arith.constant 0 : i32
    return %c0_i32, %c0_i32_0 : i32, i32
  }
  func.func @transform_2(%arg0: i32) -> (i32, i32) {
    %c0_i32 = arith.constant 0 : i32
    %c0_i32_0 = arith.constant 0 : i32
    %c0_i32_1 = arith.constant 0 : i32
    return %c0_i32, %c0_i32_0 : i32, i32
  }
  func.func @transform_3(%arg0: i32) -> (i32, i32) {
    %c0_i32 = arith.constant 0 : i32
    %c0_i32_0 = arith.constant 0 : i32
    %c0_i32_1 = arith.constant 0 : i32
    return %c0_i32, %c0_i32_0 : i32, i32
  }
  func.func @transform_4(%arg0: i32) -> (i32, i32) {
    %c0_i32 = arith.constant 0 : i32
    %c0_i32_0 = arith.constant 0 : i32
    %c0_i32_1 = arith.constant 0 : i32
    return %c0_i32, %c0_i32_0 : i32, i32
  }
  func.func @transform_5(%arg0: i32) -> (i32, i32) {
    %c0_i32 = arith.constant 0 : i32
    %c0_i32_0 = arith.constant 0 : i32
    %c0_i32_1 = arith.constant 0 : i32
    return %c0_i32, %c0_i32_0 : i32, i32
  }
  func.func @transform_6(%arg0: i32) -> (i32, i32) {
    %c0_i32 = arith.constant 0 : i32
    %c0_i32_0 = arith.constant 0 : i32
    %c0_i32_1 = arith.constant 0 : i32
    return %c0_i32, %c0_i32_0 : i32, i32
  }
  func.func @transform_7(%arg0: i32) -> (i32, i32) {
    %c0_i32 = arith.constant 0 : i32
    %c0_i32_0 = arith.constant 0 : i32
    %c0_i32_1 = arith.constant 0 : i32
    return %c0_i32, %c0_i32_0 : i32, i32
  }
  func.func @transform_8(%arg0: i32) -> (i32, i32) {
    %c0_i32 = arith.constant 0 : i32
    %c0_i32_0 = arith.constant 0 : i32
    %c0_i32_1 = arith.constant 0 : i32
    return %c0_i32, %c0_i32_0 : i32, i32
  }
  func.func @transform_9(%arg0: i32) -> (i32, i32) {
    %c0_i32 = arith.constant 0 : i32
    %c0_i32_0 = arith.constant 0 : i32
    %c0_i32_1 = arith.constant 0 : i32
    return %c0_i32, %c0_i32_0 : i32, i32
  }
  func.func @transform_10(%arg0: i32) -> (i32, i32) {
    %c0_i32 = arith.constant 0 : i32
    %c0_i32_0 = arith.constant 0 : i32
    %c0_i32_1 = arith.constant 0 : i32
    return %c0_i32, %c0_i32_0 : i32, i32
  }
  func.func @transform_11(%arg0: i32) -> (i32, i32) {
    %c0_i32 = arith.constant 0 : i32
    %c0_i32_0 = arith.constant 0 : i32
    return %arg0, %c0_i32 : i32, i32
  }
}

</mosaic_0001>

<bundles_post_ra>
// kernel: classifier_forward.1
= control target key start
LH: loop header
LB: loop body
LE: loop exit
PB: predicated region body
PF: predicated region fallthrough
CT: control target
= control target key end

     0   :  { %v734_v1 = vmov 0   ;;  %vm75_vm0 = vcmask 1042432   ;;  %vm71_vm1 = vcmask 179200   ;;  %v735_v25 = vmov 0.0   ;;  %s937_s1 = inlined_call_operand.vmem [shape: bf16[22,256], index: 1, kind: input, shape index: {}]   ;;  %s938_s0 = inlined_call_operand.vmem [shape: f32[8,22], index: 0, kind: input, shape index: {}]   ;;  %s939_s3 = inlined_call_operand.vmem [shape: bf16[256,128], index: 3, kind: input, shape index: {}]   ;;  %s940_s5 = inlined_call_operand.vmem [shape: bf16[128,64], index: 5, kind: input, shape index: {}]   ;;  %s941_s2 = inlined_call_operand.vmem [shape: f32[1,256], index: 2, kind: input, shape index: {}]   ;;  %s942_s7 = inlined_call_operand.vmem [shape: bf16[64,32], index: 7, kind: input, shape index: {}]   ;;  %s943_s4 = inlined_call_operand.vmem [shape: f32[1,128], index: 4, kind: input, shape index: {}]   ;;  %s944_s9 = inlined_call_operand.vmem [shape: bf16[32,3], index: 9, kind: input, shape index: {}]   ;;  %s945_s6 = inlined_call_operand.vmem [shape: f32[1,64], index: 6, kind: input, shape index: {}]   ;;  %s946_s8 = inlined_call_operand.vmem [shape: f32[1,32], index: 8, kind: input, shape index: {}]   ;;  %s947_s10 = inlined_call_operand.vmem [shape: f32[1,3], index: 10, kind: input, shape index: {}]   ;;  %s948_s11 = inlined_call_operand.vmem [shape: f32[8,3], index: 11, kind: output, shape index: {}]  }
   0x1   :  { %v43_v0 = vld [vmem:[%s937_s1 + $0x10] sm:$0x77]  ;;  %114 = vmatprep.mubr.bf16.mxu0 %v734_v1  ;;  %v699_v2 = vld [vmem:[%s937_s1 + $0x4] ss:$8 sps:$4 sm:$0xff]   ;;  %v702_v4 = vld [vmem:[%s937_s1] ss:$8 sps:$4 sm:$0xff]   ;;  %v46_v32 = vlaneseq }
   0x2   :  { %v578_v3 = vcombine.high %v43_v0, %v43_v0  ;;  %v577_v5 = vcombine.low %v43_v0, %v43_v0  ;;  %v39_v6 = vld [vmem:[%s938_s0] sm:$0xff]  ;;  %82 = vmatprep.subr.bf16.mxu0 %v699_v2  ;;  %v706_v9 = vld [vmem:[%s939_s3 + $0x48] sm:$0xff]   ;;  %v708_v12 = vld [vmem:[%s939_s3 + $0x50] sm:$0xff]   ;;  %vm736_vm2 = vmmov 0   ;;  %vm456_vm3 = vcmask 523264  }
   0x3   :  { %v704_v7 = vld [vmem:[%s939_s3 + $0x40] sm:$0xff]   ;;  %83 = vmatpush1.bf16.msra.mxu0 %v702_v4  ;;  %v707_v11 = vld [vmem:[%s939_s3 + $0x8] sm:$0xff]   ;;  %v40_v13 = vpack.c.bf16 %v39_v6, %v39_v6  ;;  %v709_v14 = vld [vmem:[%s939_s3 + $0x10] sm:$0xff]   ;;  %v47_v33 = vshrl.u32 %v46_v32, 7  ;;  %vm525_vm4 = vcmask 261120   ;;  %vm569_vm5 = vcmask 23552  }
   0x4   :  { %v705_v8 = vld [vmem:[%s939_s3] sm:$0xff]   ;;  %617 = vmatprep.subr.bf16.mxu1 %v704_v7  ;;  %579 = vmatprep.subr.msk.bf16.mxu0 %vm75_vm0, %v578_v3  ;;  %v77_v10 = vsel %vm75_vm0, %v577_v5, 0  ;;  %v710_v15 = vld [vmem:[%s939_s3 + $0x58] sm:$0xff]   ;;  %v714_v19 = vld [vmem:[%s939_s3 + $0x68] sm:$0xff]  }
   0x5   :  { %618 = vmatpush3.bf16.msra.mxu1 %v705_v8  ;;  %v711_v16 = vld [vmem:[%s939_s3 + $0x18] sm:$0xff]   ;;  %v712_v17 = vld [vmem:[%s939_s3 + $0x60] sm:$0xff]   ;;  %v715_v20 = vld [vmem:[%s939_s3 + $0x28] sm:$0xff]   ;;  %v48_v34 = vsub.s32 0, %v47_v33  ;;  %v52_v36 = vsub.s32 1, %v47_v33 }
   0x6   :  { %619 = vmatprep.subr.bf16.mxu1 %v706_v9  ;;  %v713_v18 = vld [vmem:[%s939_s3 + $0x20] sm:$0xff]   ;;  %v716_v21 = vld [vmem:[%s939_s3 + $0x70] sm:$0xff]   ;;  %v718_v23 = vld [vmem:[%s939_s3 + $0x78] sm:$0xff]  }
   0x7   :  { %85 = vmatpush1.bf16.msra.mxu0 %v77_v10  ;;  %v717_v22 = vld [vmem:[%s939_s3 + $0x30] sm:$0xff]   ;;  %v719_v24 = vld [vmem:[%s939_s3 + $0x38] sm:$0xff]   ;;  %v720_v26 = vld [vmem:[%s940_s5] sm:$0xff]  }
   0x8   :  { %656 = vmatprep.subr.bf16.mxu0 %v735_v25  ;;  %v721_v27 = vld [vmem:[%s940_s5 + $0x8] sm:$0xff]   ;;  %v722_v28 = vld [vmem:[%s940_s5 + $0x10] sm:$0xff]   ;;  %v723_v29 = vld [vmem:[%s940_s5 + $0x18] sm:$0xff]  }
   0x9   :  { %620 = vmatpush3.bf16.msra.mxu1 %v707_v11  ;;  %v724_v30 = vld [vmem:[%s940_s5 + $0x20] sm:$0xff]   ;;  %v725_v31 = vld [vmem:[%s940_s5 + $0x28] sm:$0xff]   ;;  %v726_v49 = vld [vmem:[%s940_s5 + $0x30] sm:$0xff]  }
   0xa   :  { %621 = vmatprep.subr.bf16.mxu1 %v708_v12  ;;  %580 = vmatmul.mubr.msk.bf16.vlgmr.msra.gmra.mrb[0].mxu0 %vm71_vm1, %v40_v13  ;;  %v44_v35 = vld [vmem:[%s941_s2] sm:$0x3]  ;;  %v727_v50 = vld [vmem:[%s940_s5 + $0x38] sm:$0xff]   ;;  %v729_v52 = vld [vmem:[%s942_s7 + $0x8] sm:$0xff]  }
   0xb   :  { %657 = vmatpush3.bf16.msra.mxu0 %v720_v26  ;;  %v49_v37 = vrot.slane %v44_v35, %v48_v34  ;;  %v53_v38 = vrot.slane %v44_v35, %v52_v36  ;;  %672 = vmatprep.mubr.msk.bf16.mxu0 %vm736_vm2, %v735_v25  ;;  %v728_v51 = vld [vmem:[%s942_s7] sm:$0xff]   ;;  %v730_v62 = vld [vmem:[%s942_s7 + $0x10] sm:$0xff]   ;;  %v731_v63 = vld [vmem:[%s942_s7 + $0x18] sm:$0xff]  }
   0xc   :  { %658 = vmatprep.subr.bf16.mxu0 %v735_v25  ;;  %v581_v54 = vld [vmem:[%s943_s4] ss:$0 sm:$0xff]  ;;  %v733_v9 = vld [vmem:[%s944_s9 + $0x8] sm:$0xff]  }
   0xd   :  { %622 = vmatpush3.bf16.msra.mxu1 %v709_v14  ;;  %v732_v0 = vld [vmem:[%s944_s9] sm:$0xff]  }
   0xe   :  { %623 = vmatprep.subr.bf16.mxu1 %v710_v15  ;;  %v598_v1 = vld [vmem:[%s945_s6] ss:$0 sm:$0xff] }
   0xf   :  { %659 = vmatpush3.bf16.msra.mxu0 %v721_v27  ;;  %v607_v10 = vld [vmem:[%s946_s8] ss:$0 sm:$0xff] }
  0x10   :  { %660 = vmatprep.subr.bf16.mxu0 %v735_v25 }
  0x11   :  { %624 = vmatpush3.bf16.msra.mxu1 %v711_v16 }
  0x12   :  { %625 = vmatprep.subr.bf16.mxu1 %v712_v17 }
  0x13   :  { %661 = vmatpush3.bf16.msra.mxu0 %v722_v28 }
  0x14   :  { %662 = vmatprep.subr.bf16.mxu0 %v735_v25 }
  0x15   :  { %626 = vmatpush3.bf16.msra.mxu1 %v713_v18  ;;  %v613_v18 = vld [vmem:[%s947_s10] ss:$0 sm:$0xff] }
  0x16   :  { %627 = vmatprep.subr.bf16.mxu1 %v714_v19 }
  0x17   :  { %663 = vmatpush3.bf16.msra.mxu0 %v723_v29 }
  0x18   :  { %664 = vmatprep.subr.bf16.mxu0 %v735_v25 }
  0x19   :  { %628 = vmatpush3.bf16.msra.mxu1 %v715_v20 }
  0x1a   :  { %629 = vmatprep.subr.bf16.mxu1 %v716_v21 }
  0x1b   :  { %665 = vmatpush3.bf16.msra.mxu0 %v724_v30 }
  0x1c   :  { %666 = vmatprep.subr.bf16.mxu0 %v735_v25 }
  0x1d   :  { %630 = vmatpush3.bf16.msra.mxu1 %v717_v22 }
  0x1e   :  { %631 = vmatprep.subr.bf16.mxu1 %v718_v23 }
  0x1f   :  { %667 = vmatpush3.bf16.msra.mxu0 %v725_v31 }
  0x20   :  { %668 = vmatprep.subr.bf16.mxu0 %v735_v25 }
  0x21   :  { %632 = vmatpush3.bf16.msra.mxu1 %v719_v24 }
  0x22   :  { %676 = vmatprep.subr.bf16.mxu1 %v735_v25 }
  0x23   :  { %669 = vmatpush3.bf16.msra.mxu0 %v726_v49 }
  0x24   :  { %670 = vmatprep.subr.bf16.mxu0 %v735_v25 }
  0x27   :  { %671 = vmatpush3.bf16.msra.mxu0 %v727_v50 }
  0x28   :  { %688 = vmatprep.subr.bf16.mxu0 %v735_v25 }
  0xdd   :  { %v116_v39 = vpop.f32.mrb[0].mxu0 }
  0xde   :  { %v117_v40 = vadd.f32 %v116_v39, %v49_v37  ;;  %v118_v41 = vpop.f32.mrb[1].mxu0 }
  0xdf   :  { %v119_v42 = vadd.f32 %v118_v41, %v53_v38  ;;  %v120_v43 = vpop.f32.mrb[2].mxu0 }
  0xe0   :  { %v123_v44 = vmax.f32 %v117_v40, 0.0  ;;  %v121_v45 = vpop.f32.mrb[3].mxu0 }
  0xe1   :  { %v124_v46 = vmax.f32 %v119_v42, 0.0 }
  0xe2   :  { %v125_v48 = vpack.c.bf16 %v123_v44, %v123_v44 }
  0xe3   :  { %v126_v47 = vpack.c.bf16 %v124_v46, %v124_v46 }
  0xe5   :  { %294 = vmatprep.mubr.bf16.mxu1 %v126_v47 }
  0xe6   :  { %295 = vmatmul.mubr.bf16.vlgmr.msra.gmra.mrb[0].mxu1 %v125_v48 }
  0xe7   :  { %684 = vmatprep.mubr.msk.bf16.mxu1 %vm736_vm2, %v735_v25  ;;  %677 = vmatpush3.bf16.msra.mxu1 %v728_v51 }
  0xe8   :  { %678 = vmatprep.subr.bf16.mxu1 %v735_v25 }
  0xeb   :  { %679 = vmatpush3.bf16.msra.mxu1 %v729_v52 }
  0xec   :  { %680 = vmatprep.subr.bf16.mxu1 %v735_v25 }
  0xef   :  { %681 = vmatpush3.bf16.msra.mxu1 %v730_v62 }
  0xf0   :  { %682 = vmatprep.subr.bf16.mxu1 %v735_v25 }
  0xf3   :  { %683 = vmatpush3.bf16.msra.mxu1 %v731_v63 }
 0x1b9   :  { %v633_v53 = vpop.f32.mrb[0].mxu1 }
 0x1ba   :  { %v634_v55 = vpop.f32.mrb[1].mxu1 }
 0x1bb   :  { %v635_v56 = vadd.f32 %v634_v55, %v633_v53  ;;  %v636_v57 = vpop.f32.mrb[2].mxu1 }
 0x1bc   :  { %v637_v58 = vpop.f32.mrb[3].mxu1 }
 0x1bd   :  { %v297_v59 = vadd.f32 %v635_v56, %v581_v54 }
 0x1bf   :  { %v302_v60 = vmax.f32 %v297_v59, 0.0 }
 0x1c1   :  { %v303_v61 = vpack.c.bf16 %v302_v60, %v302_v60 }
 0x1c3   :  { %673 = vmatmul.mubr.bf16.vlgmr.msra.gmra.mrb[4].mxu0 %v303_v61 }
 0x1c4   :  { %692 = vmatprep.mubr.msk.bf16.mxu0 %vm736_vm2, %v735_v25  ;;  %689 = vmatpush3.bf16.msra.mxu0 %v732_v0 }
 0x1c5   :  { %690 = vmatprep.subr.bf16.mxu0 %v735_v25 }
 0x1c8   :  { %691 = vmatpush3.bf16.msra.mxu0 %v733_v9 }
 0x296   :  { %v409_v2 = vpop.f32.mrb[4].mxu0 }
 0x297   :  { %v410_v3 = vadd.f32 %v598_v1, %v409_v2  ;;  %v674_v4 = vpop.f32.mrb[5].mxu0 }
 0x298   :  { %v412_v5 = vpop.f32.mrb[6].mxu0 }
 0x299   :  { %v415_v6 = vmax.f32 %v410_v3, 0.0  ;;  %v675_v7 = vpop.f32.mrb[7].mxu0 }
 0x29b   :  { %v416_v8 = vpack.c.bf16 %v415_v6, %v415_v6 }
 0x29d   :  { %685 = vmatmul.mubr.msk.bf16.vlgmr.msra.gmra.mrb[4].mxu1 %vm456_vm3, %v416_v8 }
 0x370   :  { %v494_v11 = vpop.f32.mrb[4].mxu1 }
 0x371   :  { %v495_v12 = vadd.f32 %v607_v10, %v494_v11  ;;  %v686_v13 = vpop.f32.mrb[5].mxu1 }
 0x372   :  { %v497_v14 = vpop.f32.mrb[6].mxu1 }
 0x373   :  { %v500_v15 = vmax.f32 %v495_v12, 0.0  ;;  %v687_v16 = vpop.f32.mrb[7].mxu1 }
 0x375   :  { %v501_v17 = vpack.c.bf16 %v500_v15, %v500_v15 }
 0x377   :  { %693 = vmatmul.mubr.msk.bf16.vlgmr.msra.gmra.mrb[8].mxu0 %vm525_vm4, %v501_v17 }
 0x44a   :  { %v563_v19 = vpop.f32.mrb[8].mxu0 }
 0x44b   :  { %v564_v20 = vadd.f32 %v613_v18, %v563_v19  ;;  %v694_v21 = vpop.f32.mrb[9].mxu0 }
 0x44c   :  { %v566_v22 = vpop.f32.mrb[10].mxu0 }
 0x44d   :  { %570 = vst.msk [vmem:[%s948_s11] sm:$0xff] %vm569_vm5, %v564_v20  ;;  %v695_v23 = vpop.f32.mrb[11].mxu0 }

</bundles_post_ra>
